<compile_context>
chip_gen: v5e
topology: v5e:2x2
jax: 0.10.0
libtpu: 0.0.40
codegen_flags: <defaults>
</compile_context>

<pallas_src>
import numpy as np
import jax
import jax.numpy as jnp
from jax.experimental import pallas as pl
from jax.experimental.pallas import tpu as pltpu

EPS = 1e-5
NEG_LARGE = -1e30  # behaves as -inf under ReLU: relu(finite + NEG_LARGE) == 0


# ----------------------------------------------------------------------------
# glue: small matrices reproducing AdaptiveAvgPool2d / bilinear(align_corners)
# ----------------------------------------------------------------------------
def adaptive_pool_matrix(out_size, in_size):
    """A[i, h] = 1/len(window_i) for h in window_i  (PyTorch AdaptiveAvgPool)."""
    A = np.zeros((out_size, in_size), np.float32)
    for i in range(out_size):
        start = (i * in_size) // out_size
        end = -(-((i + 1) * in_size) // out_size)  # ceil div
        A[i, start:end] = 1.0 / (end - start)
    return A


def bilinear_matrix(out_size, in_size):
    """U[o, k]: bilinear interpolation weights, align_corners=True."""
    U = np.zeros((out_size, in_size), np.float32)
    if in_size == 1:
        U[:, 0] = 1.0
        return U
    for o in range(out_size):
        src = o * (in_size - 1) / (out_size - 1)
        k0 = min(int(np.floor(src)), in_size - 2)
        frac = src - k0
        U[o, k0] += 1.0 - frac
        U[o, k0 + 1] += frac
    return U


def _pick_hw_tile(hw):
    """Lane-dense (multiple-of-128) HW tile, >=512 preferred; fallback = full HW."""
    if hw % 128 != 0:
        # TODO(synk): zero-pad HW to a multiple of 128 (and slice off after) for
        # lane-dense tiles at e.g. 60x60 PSPNet feature maps.
        return hw
    for t in (2048, 1024, 512, 256, 128):
        if hw % t == 0:
            return t
    return hw


# ----------------------------------------------------------------------------
# kernel 1: pooling (accumulated over HW tiles) + fused 1x1-conv/BN/ReLU/mask
# ----------------------------------------------------------------------------
def make_pool_conv_kernel():
    def kernel(x_ref, pT_ref, w_ref, shm_ref, y_ref, acc_ref):
        # x_ref  : (1, C, t)   f32   (HW tile of one image)
        # pT_ref : (t, S)      bf16  (matching row-slice of the pooling matrix)
        # w_ref  : (B*R, C)    bf16  (BN scale folded into 1x1-conv weight)
        # shm_ref: (B*R, S)    f32   (BN shift on in-bin cols, -1e30 off-bin)
        # y_ref  : (1, B*R, S) bf16  (per-image pooled/conv result)
        # acc_ref: (C, S)      f32   VMEM scratch accumulator
        k = pl.program_id(1)

        @pl.when(k == 0)
        def _():
            acc_ref[...] = jnp.zeros_like(acc_ref)

        xb = x_ref[0].astype(jnp.bfloat16)              # cast in VMEM (VPU, ~free)
        acc_ref[...] += jnp.dot(xb, pT_ref[...],
                                preferred_element_type=jnp.float32)    # (C, S)

        @pl.when(k == pl.num_programs(1) - 1)
        def _():
            y = jnp.dot(w_ref[...], acc_ref[...].astype(jnp.bfloat16),
                        preferred_element_type=jnp.float32)            # (B*R, S)
            # BN shift + ReLU; off-bin columns are pushed to -1e30 -> exactly 0.
            y = jnp.maximum(y + shm_ref[...], 0.0)
            y_ref[0] = y.astype(y_ref.dtype)

    return kernel


# ----------------------------------------------------------------------------
# kernel 2: one big upsample matmul per HW tile + fused concat with x
# ----------------------------------------------------------------------------
def make_upsample_concat_kernel(C):
    def kernel(y_ref, uT_ref, x_ref, out_ref):
        # y_ref  : (1, B*R, S)      bf16
        # uT_ref : (S, t)           bf16  (column-slice of the upsample matrix)
        # x_ref  : (1, C, t)        f32
        # out_ref: (1, C + B*R, t)  bf16  (final concat layout, lane-dense store)
        up = jnp.dot(y_ref[0], uT_ref[...],
                     preferred_element_type=jnp.float32)               # (B*R, t)
        out_ref[0, :C, :] = x_ref[0].astype(out_ref.dtype)             # passthrough x
        out_ref[0, C:, :] = up.astype(out_ref.dtype)                   # branches

    return kernel


# ----------------------------------------------------------------------------
# wrapper
# ----------------------------------------------------------------------------
def ppm_forward(x_nchw, params, bins, reduction_dim):
    """params[b] = (Wconv (R,C), gamma (R,), beta (R,), running_mean (R,), running_var (R,))."""
    N, C, H, W = x_nchw.shape
    R = reduction_dim
    B = len(bins)
    HW = H * W
    S = sum(bn * bn for bn in bins)
    t = _pick_hw_tile(HW)
    Kt = HW // t

    # channels-first flatten: free reshape, NO transpose; keep f32 (cast in-kernel).
    x_flat = x_nchw.reshape(N, C, HW)

    P_rows, U_rows, W_rows, sh_vals = [], [], [], []
    mask_np = np.zeros((B * R, S), np.float32)
    off = 0
    for b, bn in enumerate(bins):
        Ah = adaptive_pool_matrix(bn, H)
        Aw = adaptive_pool_matrix(bn, W)
        P_rows.append(np.kron(Ah, Aw))                    # (bin^2, HW)
        Uh = bilinear_matrix(H, bn)
        Uw = bilinear_matrix(W, bn)
        U_rows.append(np.kron(Uh, Uw).T)                  # (bin^2, HW)

        Wconv, gamma, beta, mean, var = params[b]
        scale = gamma / jnp.sqrt(var + EPS)               # fold eval-mode BN scale
        W_rows.append(Wconv * scale[:, None])             # (R, C)
        sh_vals.append(beta - mean * scale)               # (R,)
        mask_np[b * R:(b + 1) * R, off:off + bn * bn] = 1.0
        off += bn * bn

    P_all_T = jnp.asarray(np.concatenate(P_rows, 0).T, dtype=jnp.bfloat16)   # (HW, S)
    U_all_T = jnp.asarray(np.concatenate(U_rows, 0), dtype=jnp.bfloat16)     # (S, HW)
    W_all = jnp.concatenate(W_rows, 0).astype(jnp.bfloat16)                  # (B*R, C)
    sh_all = jnp.concatenate(sh_vals, 0).astype(jnp.float32)                 # (B*R,)
    # Shift + block-diagonal mask fused into one operand.
    shm = jnp.where(jnp.asarray(mask_np) > 0, sh_all[:, None],
                    jnp.float32(NEG_LARGE))                                   # (B*R, S)

    cparams = pltpu.CompilerParams(
        dimension_semantics=("parallel", "arbitrary"),
        vmem_limit_bytes=48 * 1024 * 1024,
    )
    cost1 = pl.CostEstimate(
        flops=int(N * (2 * C * HW * S + 2 * (B * R) * C * S)),
        transcendentals=0,
        bytes_accessed=int(N * C * HW * 4 + HW * S * 2 + B * R * C * 2
                           + B * R * S * 4 + N * B * R * S * 2),
    )
    # Pass 1: pooling (reduction over HW tiles) + fused conv/BN/ReLU/mask.
    y_all = pl.pallas_call(
        make_pool_conv_kernel(),
        out_shape=jax.ShapeDtypeStruct((N, B * R, S), jnp.bfloat16),
        grid=(N, Kt),
        in_specs=[
            pl.BlockSpec((1, C, t), lambda n, k: (n, 0, k)),
            pl.BlockSpec((t, S), lambda n, k: (k, 0)),
            pl.BlockSpec((B * R, C), lambda n, k: (0, 0)),   # grid-invariant
            pl.BlockSpec((B * R, S), lambda n, k: (0, 0)),   # grid-invariant
        ],
        out_specs=pl.BlockSpec((1, B * R, S), lambda n, k: (n, 0, 0)),
        scratch_shapes=[pltpu.VMEM((C, S), jnp.float32)],
        compiler_params=cparams,
        cost_estimate=cost1,
    )(x_flat, P_all_T, W_all, shm)

    cparams2 = pltpu.CompilerParams(
        dimension_semantics=("parallel", "parallel"),
        vmem_limit_bytes=48 * 1024 * 1024,
    )
    cost2 = pl.CostEstimate(
        flops=int(2 * N * (B * R) * S * HW),
        transcendentals=0,
        bytes_accessed=int(N * B * R * S * 2 + S * HW * 2 + N * C * HW * 4
                           + N * (C + B * R) * HW * 2),
    )
    # Pass 2: one (B*R, S) @ (S, t) upsample matmul per HW tile, concat fused,
    # lane-dense bf16 output slab.
    out = pl.pallas_call(
        make_upsample_concat_kernel(C),
        out_shape=jax.ShapeDtypeStruct((N, C + B * R, HW), jnp.bfloat16),
        grid=(N, Kt),
        in_specs=[
            pl.BlockSpec((1, B * R, S), lambda n, j: (n, 0, 0)),
            pl.BlockSpec((S, t), lambda n, j: (0, j)),
            pl.BlockSpec((1, C, t), lambda n, j: (n, 0, j)),
        ],
        out_specs=pl.BlockSpec((1, C + B * R, t), lambda n, j: (n, 0, j)),
        compiler_params=cparams2,
        cost_estimate=cost2,
    )(y_all, U_all_T, x_flat)

    # (N, C+B*R, HW) -> (N, C+B*R, H, W): free reshape, no transpose.
    return out.reshape(N, C + B * R, H, W)


# ----------------------------------------------------------------------------
# pure-JAX reference (mirrors the PyTorch forward op-by-op, eval-mode BN, f32)
# ----------------------------------------------------------------------------
def ref_ppm(x_nchw, params, bins, reduction_dim):
    N, C, H, W = x_nchw.shape
    outs = [x_nchw]
    for b, bn in enumerate(bins):
        Ah = jnp.asarray(adaptive_pool_matrix(bn, H))
        Aw = jnp.asarray(adaptive_pool_matrix(bn, W))
        pooled = jnp.einsum('ih,jw,nchw->ncij', Ah, Aw, x_nchw)
        Wconv, gamma, beta, mean, var = params[b]
        y = jnp.einsum('rc,ncij->nrij', Wconv, pooled)
        scale = gamma / jnp.sqrt(var + EPS)
        y = y * scale[None, :, None, None] + (beta - mean * scale)[None, :, None, None]
        y = jnp.maximum(y, 0.0)
        Uh = jnp.asarray(bilinear_matrix(H, bn))
        Uw = jnp.asarray(bilinear_matrix(W, bn))
        outs.append(jnp.einsum('Hi,Wj,nrij->nrHW', Uh, Uw, y))
    return jnp.concatenate(outs, axis=1)


# ----------------------------------------------------------------------------
if __name__ == "__main__":
    N, C, H, W = 2, 4, 16, 16
    reduction_dim = 2
    bins = (1, 2, 3, 6)

    key = jax.random.PRNGKey(0)
    key, kx = jax.random.split(key)
    x = jax.random.normal(kx, (N, C, H, W), dtype=jnp.float32)

    # deterministic synthetic parameters (one Conv1x1 + BN per pyramid branch)
    params = []
    for _ in bins:
        key, k1, k2, k3, k4, k5 = jax.random.split(key, 6)
        Wconv = 0.1 * jax.random.normal(k1, (reduction_dim, C), dtype=jnp.float32)
        gamma = 1.0 + 0.1 * jax.random.normal(k2, (reduction_dim,), dtype=jnp.float32)
        beta = 0.1 * jax.random.normal(k3, (reduction_dim,), dtype=jnp.float32)
        mean = 0.1 * jax.random.normal(k4, (reduction_dim,), dtype=jnp.float32)
        var = jax.random.uniform(k5, (reduction_dim,), dtype=jnp.float32,
                                 minval=0.5, maxval=1.5)
        params.append((Wconv, gamma, beta, mean, var))

    out = ppm_forward(x, params, bins, reduction_dim)
    out = jax.block_until_ready(out)

    expected_channels = C + len(bins) * reduction_dim
    assert out.shape == (N, expected_channels, H, W), out.shape

    ref = jax.block_until_ready(ref_ppm(x, params, bins, reduction_dim))
    # bf16 output (incl. the passthrough x slab) + bf16 MXU inputs -> ~1% tol.
    np.testing.assert_allclose(np.asarray(out.astype(jnp.float32)), np.asarray(ref),
                               rtol=2e-2, atol=2e-2)

    print("KERNEL_OK")
</pallas_src>

<mosaic_0001>
module attributes {stable_mosaic.version = 11 : i64} {
  func.func @kernel(%arg0: i32, %arg1: i32, %arg2: memref<1x4x256xf32, #tpu.memory_space<vmem>>, %arg3: memref<256x50xbf16, #tpu.memory_space<vmem>>, %arg4: memref<8x4xbf16, #tpu.memory_space<vmem>>, %arg5: memref<8x50xf32, #tpu.memory_space<vmem>>, %arg6: memref<1x8x50xbf16, #tpu.memory_space<vmem>>, %arg7: memref<4x50xf32, #tpu.memory_space<vmem>>) attributes {dimension_semantics = [#tpu.dimension_semantics<parallel>, #tpu.dimension_semantics<arbitrary>], iteration_bounds = array<i64: 2, 1>, scalar_prefetch = 0 : i64, scratch_operands = 1 : i64, tpu.core_type = #tpu.core_type<tc>, window_params = [{transform_indices = @transform_0, window_bounds = array<i64: 1, 4, 256>}, {transform_indices = @transform_1, window_bounds = array<i64: 256, 50>}, {pipeline_mode = #tpu.pipeline_mode<synchronous>, transform_indices = @transform_2, window_bounds = array<i64: 8, 4>}, {pipeline_mode = #tpu.pipeline_mode<synchronous>, transform_indices = @transform_3, window_bounds = array<i64: 8, 50>}, {transform_indices = @transform_4, window_bounds = array<i64: 1, 8, 50>}]} {
    %c0_i32 = arith.constant 0 : i32
    %0 = arith.cmpi eq, %arg1, %c0_i32 : i32
    %1 = arith.extui %0 : i1 to i32
    %c0_i32_0 = arith.constant 0 : i32
    %2 = arith.cmpi ne, %1, %c0_i32_0 : i32
    scf.if %2 {
      %cst_11 = arith.constant 0.000000e+00 : f32
      %14 = vector.broadcast %cst_11 : f32 to vector<4x50xf32>
      %c0_12 = arith.constant 0 : index
      %c0_13 = arith.constant 0 : index
      %15 = vector.load %arg7[%c0_12, %c0_13] : memref<4x50xf32, #tpu.memory_space<vmem>>, vector<4x50xf32>
      tpu.vector_store %arg7[%c0_12, %c0_13], %14 {strides = array<i32>} : memref<4x50xf32, #tpu.memory_space<vmem>>, vector<4x50xf32>,
    } else {
    }
    %c0 = arith.constant 0 : index
    %c0_1 = arith.constant 0 : index
    %c0_2 = arith.constant 0 : index
    %3 = vector.load %arg2[%c0, %c0_1, %c0_2] : memref<1x4x256xf32, #tpu.memory_space<vmem>>, vector<1x4x256xf32>
    %4 = vector.shape_cast %3 : vector<1x4x256xf32> to vector<4x256xf32>
    %5 = arith.truncf %4 : vector<4x256xf32> to vector<4x256xbf16>
    %c0_3 = arith.constant 0 : index
    %c0_4 = arith.constant 0 : index
    %6 = vector.load %arg7[%c0_3, %c0_4] : memref<4x50xf32, #tpu.memory_space<vmem>>, vector<4x50xf32>
    %c0_5 = arith.constant 0 : index
    %c0_6 = arith.constant 0 : index
    %7 = vector.load %arg3[%c0_5, %c0_6] : memref<256x50xbf16, #tpu.memory_space<vmem>>, vector<256x50xbf16>
    %cst = arith.constant dense<0.000000e+00> : vector<4x50xf32>
    %8 = tpu.matmul %5, %7, %cst {dimension_numbers = #tpu.dot_dimension_numbers<[1], [0], [0], [1], [0, 0, 1, 1], [], []>} : vector<4x256xbf16>, vector<256x50xbf16>, vector<4x50xf32> -> vector<4x50xf32>
    %9 = arith.addf %6, %8 : vector<4x50xf32>
    %c0_7 = arith.constant 0 : index
    %c0_8 = arith.constant 0 : index
    %10 = vector.load %arg7[%c0_7, %c0_8] : memref<4x50xf32, #tpu.memory_space<vmem>>, vector<4x50xf32>
    tpu.vector_store %arg7[%c0_7, %c0_8], %9 {strides = array<i32>} : memref<4x50xf32, #tpu.memory_space<vmem>>, vector<4x50xf32>,
    %c0_i32_9 = arith.constant 0 : i32
    %11 = arith.cmpi eq, %arg1, %c0_i32_9 : i32
    %12 = arith.extui %11 : i1 to i32
    %c0_i32_10 = arith.constant 0 : i32
    %13 = arith.cmpi ne, %12, %c0_i32_10 : i32
    scf.if %13 {
      %c0_11 = arith.constant 0 : index
      %c0_12 = arith.constant 0 : index
      %14 = vector.load %arg4[%c0_11, %c0_12] : memref<8x4xbf16, #tpu.memory_space<vmem>>, vector<8x4xbf16>
      %c0_13 = arith.constant 0 : index
      %c0_14 = arith.constant 0 : index
      %15 = vector.load %arg7[%c0_13, %c0_14] : memref<4x50xf32, #tpu.memory_space<vmem>>, vector<4x50xf32>
      %16 = arith.truncf %15 : vector<4x50xf32> to vector<4x50xbf16>
      %cst_15 = arith.constant dense<0.000000e+00> : vector<8x50xf32>
      %17 = tpu.matmul %14, %16, %cst_15 {dimension_numbers = #tpu.dot_dimension_numbers<[1], [0], [0], [1], [0, 0, 1, 1], [], []>} : vector<8x4xbf16>, vector<4x50xbf16>, vector<8x50xf32> -> vector<8x50xf32>
      %c0_16 = arith.constant 0 : index
      %c0_17 = arith.constant 0 : index
      %18 = vector.load %arg5[%c0_16, %c0_17] : memref<8x50xf32, #tpu.memory_space<vmem>>, vector<8x50xf32>
      %19 = arith.addf %17, %18 : vector<8x50xf32>
      %cst_18 = arith.constant 0.000000e+00 : f32
      %20 = vector.broadcast %cst_18 : f32 to vector<8x50xf32>
      %21 = arith.maximumf %19, %20 : vector<8x50xf32>
      %22 = arith.truncf %21 : vector<8x50xf32> to vector<8x50xbf16>
      %c0_19 = arith.constant 0 : index
      %c0_20 = arith.constant 0 : index
      %c0_21 = arith.constant 0 : index
      %23 = vector.load %arg6[%c0_19, %c0_20, %c0_21] : memref<1x8x50xbf16, #tpu.memory_space<vmem>>, vector<1x8x50xbf16>
      %24 = vector.shape_cast %23 : vector<1x8x50xbf16> to vector<8x50xbf16>
      %25 = vector.shape_cast %22 : vector<8x50xbf16> to vector<1x8x50xbf16>
      tpu.vector_store %arg6[%c0_19, %c0_20, %c0_21], %25 {strides = array<i32>} : memref<1x8x50xbf16, #tpu.memory_space<vmem>>, vector<1x8x50xbf16>,
    } else {
    }
    return
  }
  func.func @transform_0(%arg0: i32, %arg1: i32) -> (i32, i32, i32) {
    %c0_i32 = arith.constant 0 : i32
    %c0_i32_0 = arith.constant 0 : i32
    return %arg0, %c0_i32, %arg1 : i32, i32, i32
  }
  func.func @transform_1(%arg0: i32, %arg1: i32) -> (i32, i32) {
    %c0_i32 = arith.constant 0 : i32
    %c0_i32_0 = arith.constant 0 : i32
    return %arg1, %c0_i32 : i32, i32
  }
  func.func @transform_2(%arg0: i32, %arg1: i32) -> (i32, i32) {
    %c0_i32 = arith.constant 0 : i32
    %c0_i32_0 = arith.constant 0 : i32
    %c0_i32_1 = arith.constant 0 : i32
    return %c0_i32, %c0_i32_0 : i32, i32
  }
  func.func @transform_3(%arg0: i32, %arg1: i32) -> (i32, i32) {
    %c0_i32 = arith.constant 0 : i32
    %c0_i32_0 = arith.constant 0 : i32
    %c0_i32_1 = arith.constant 0 : i32
    return %c0_i32, %c0_i32_0 : i32, i32
  }
  func.func @transform_4(%arg0: i32, %arg1: i32) -> (i32, i32, i32) {
    %c0_i32 = arith.constant 0 : i32
    %c0_i32_0 = arith.constant 0 : i32
    %c0_i32_1 = arith.constant 0 : i32
    return %arg0, %c0_i32, %c0_i32_0 : i32, i32, i32
  }
}

</mosaic_0001>

<bundles_post_ra>
// kernel: tpu_custom_call.1
= control target key start
LH: loop header
LB: loop body
LE: loop exit
PB: predicated region body
PF: predicated region fallthrough
CT: control target
= control target key end

     0   :  { %9 = vsyncpa [#allocation4], 0  ;;  %s966_s0 = inlined_call_operand.vmem [shape: f32[2,4,256], index: 0, kind: input, shape index: {}]   ;;  %s967_s1 = inlined_call_operand.vmem [shape: bf16[256,50], index: 1, kind: input, shape index: {}]   ;;  %s968_s2 = inlined_call_operand.vmem [shape: bf16[8,4], index: 2, kind: input, shape index: {}]   ;;  %s969_s3 = inlined_call_operand.vmem [shape: f32[8,50], index: 3, kind: input, shape index: {}]   ;;  %s970_s4 = inlined_call_operand.hbm [shape: bf16[2,8,50], index: 4, kind: output, shape index: {}]  }
   0x1   :  { %11 = vsyncpa [#allocation4 + $0x1], 0  ;;  %s812_s15 = smov 0   ;;  %s814_s16 = smov 0  }
   0x2   :  { %s816_s17 = smov 0   ;;  %s818_s18 = smov 0  }
   0x3   :  { %s820_s19 = smov 0   ;;  %s822_s20 = smov 0  }
   0x4 LB: > { %s555_s21 = sadd.s32 4294967295, %s784_s20   ;;  %s556_s22 = sadd.s32 4294967294, %s784_s20   ;;  %s784_s20 = sphi %s822_s20, %s17_s20   ;;  %s780_s19 = sphi %s820_s19, %s977_s19   ;;  %s776_s18 = sphi %s818_s18, %s976_s18   ;;  %s772_s17 = sphi %s816_s17, %s975_s17   ;;  %s768_s16 = sphi %s814_s16, %s974_s16   ;;  %s764_s15 = sphi %s812_s15, %s973_s15  }
   0x5   : > { %s29_s23 = sadd.s32 1, %s780_s19  ;;  %s132_s24 = sadd.s32 1, %s772_s17 }
   0x6   : > { %p31_p0 = scmp.ge.s32.totalorder %s29_s23, 2  ;;  %p142_p1 = scmp.ne.s32.totalorder %s772_s17, %s768_s16 }
   0x7   : > { %p143_p2 = scmp.eq.s32.totalorder %s555_s21, 1  ;;  %p148_p3 = scmp.ne.s32.totalorder %s768_s16, %s764_s15 }
   0x8   : > { %s979_s23 = smov (%p31_p0, %s29_s23), 0  ;;  %p149_p5 = scmp.eq.s32.totalorder %s556_s22, 1 }
   0x9   : > { %p852_p4 = por %p143_p2, %p142_p1  ;;  %s129_s26 = ssub.s32 %s780_s19, %s979_s23 }
   0xa   : > { %p560_p6 = scmp.ge.s32.totalorder %s784_s20, 1  ;;  %p130_p7 = scmp.eq.s32.totalorder %s129_s26, 0 }
   0xb   : > { %p859_p8 = por %p149_p5, %p148_p3  ;;  %p195_p9 = scmp.lt.s32.totalorder %s784_s20, 3 }
   0xc   : > { %s865_s28 = scalar_select %p130_p7, %s772_s17, %s132_s24  }
   0xd   : > { %p196_p10 = pnand %p560_p6, %p195_p9 }
   0xe   : > { %p231_p11 = scmp.lt.s32.totalorder (!%p196_p10), %s776_s18, 1  ;;  %s227_s10 = sand.u32 (!%p196_p10), 1, %s768_s16  }
   0xf   : > { %199 = sbr.rel (%p196_p10) target bundleno = 339 (0x153), region = 36  ;;  %s726_s9 = scalar_lea.hbm (!%p196_p10), %s970_s4, 8 }
  0x14   : > { %v641_v0 = vld [vmem:[%s967_s1 + $0x38] sm:$0xff]  ;;  %v640_v2 = vld [vmem:[%s967_s1 + $0x30] sm:$0xff]  ;;  %s232_s11 = scalar_select %p231_p11, %s776_s18, 1  ;;  %v639_v4 = vld [vmem:[%s967_s1 + $0x28] sm:$0xff]  ;;  %vm251_vm0 = vcmask 404480   ;;  %v786_v21 = vmov 0.0  }
  0x15   : > { %v649_v1 = vld [vmem:[%s967_s1 + $0x78] sm:$0xff]  ;;  %391 = vmatpush.bf16.msra.mxu0 %v641_v0  ;;  %v648_v3 = vld [vmem:[%s967_s1 + $0x70] sm:$0xff]  ;;  %v647_v5 = vld [vmem:[%s967_s1 + $0x68] sm:$0xff]  ;;  %252 = vst.msk [vmem:[#allocation2] sm:$0xf] %vm251_vm0, %v786_v21  ;;  %vm431_vm1 = vcmask 1041408  }
  0x16   : > { %404 = vmatpush.bf16.msra.mxu1 %v649_v1  ;;  %s633_s12 = sshll.u32 %s232_s11, 3  ;;  %v638_v7 = vld [vmem:[%s967_s1 + $0x20] sm:$0xff]  ;;  %v637_v9 = vld [vmem:[%s967_s1 + $0x18] sm:$0xff]  ;;  %v636_v11 = vld [vmem:[%s967_s1 + $0x10] sm:$0xff]  ;;  %vm427_vm2 = vcmask 31744   ;;  %s561_s11 = sshll.u32 %s227_s10, 2 }
  0x17   : > { %s238_s21 = scalar_lea.vmem %s966_s0, %s633_s12  ;;  %v646_v8 = vld [vmem:[%s967_s1 + $0x60] sm:$0xff]  ;;  %v645_v10 = vld [vmem:[%s967_s1 + $0x58] sm:$0xff]  ;;  %v644_v12 = vld [vmem:[%s967_s1 + $0x50] sm:$0xff]  ;;  %s630_s12 = sshll.u32 %s776_s18, 2 }
  0x18   : > { %v253_v6 = vld [vmem:[%s238_s21] sm:$0xff]  ;;  %v635_v13 = vld [vmem:[%s967_s1 + $0x8] sm:$0xff]  ;;  %s462_s24 = scalar_lea.hbm %s970_s4, %s630_s12  ;;  %s229_s26 = scalar_lea.vmem [#allocation3], %s561_s11 }
  0x19   : > { %392 = vmatpush.bf16.msra.mxu0 %v640_v2  ;;  %255 = vst [vmem:[#allocation1] ss:$2 sm:$0xff] %v253_v6  ;;  %v643_v14 = vld [vmem:[%s967_s1 + $0x48] sm:$0xff]  ;;  %v634_v15 = vld [vmem:[%s967_s1] sm:$0xff]  ;;  %s464_s29 = sshll.u32 %s229_s26, 4  ;;  %s466_s30 = sshll.u32 %s462_s24, 4  ;;  %s465_s29 = int_to_ptr.vmem [resolvable:$true] %s464_s29  ;;  %s467_s30 = int_to_ptr.hbm [resolvable:$true] %s466_s30 }
  0x1a   : > { %405 = vmatpush.bf16.msra.mxu1 %v648_v3  ;;  %v642_v16 = vld [vmem:[%s967_s1 + $0x40] sm:$0xff]  ;;  %s452_s18 = scalar_lea.sflag [#allocation4], %s227_s10  ;;  %s720_s5 = sshra.s32 %s467_s30, 4  ;;  %s721_s5 = int_to_ptr.hbm [resolvable:$true] %s720_s5 }
  0x1b   : > { %v423_v32 = vld [vmem:[%s968_s2] sm:$0xf]  ;;  %s722_s6 = scalar_lea.hbm %s721_s5, 4  ;;  %p727_p1 = scmp.lt.s32.totalorder %s721_s5, %s970_s4 }
  0x1c   : > { %v262_v23 = vld [vmem:[#allocation2] sm:$0xf]  ;;  %v426_v33 = vld [vmem:[%s969_s3] sm:$0xff]  ;;  %p723_p12 = scmp.ne.s32.totalorder %s721_s5, %s722_s6  ;;  %p728_p2 = scmp.lt.s32.totalorder %s726_s9, %s722_s6 }
  0x1d   : > { %393 = vmatpush.bf16.msra.mxu0 %v639_v4 }
  0x1e   : > { %406 = vmatpush.bf16.msra.mxu1 %v647_v5  ;;  %p724_p13 = pnand %p723_p12, %p852_p4  ;;  %p729_p3 = por %p728_p2, %p727_p1 }
  0x20   : > { %v256_v17 = vld.sshfl [vmem:[#allocation1] sm:$0xff pattern:$0x75316420]  ;;  %v257_v18 = vld.sshfl [vmem:[#allocation1 + $0x8] sm:$0xff pattern:$0x75316420]  ;;  %p725_p0 = pneg %p724_p13 }
  0x21   : > { %394 = vmatpush.bf16.msra.mxu0 %v638_v7  ;;  %v260_v19 = vpack.c.bf16 %v256_v17, %v256_v17  ;;  %v261_v20 = vpack.c.bf16 %v257_v18, %v257_v18 }
  0x22   : > { %407 = vmatpush.bf16.msra.mxu1 %v646_v8  ;;  %p730_p5 = pnand %p729_p3, %p725_p0 }
  0x25   : > { %395 = vmatpush.bf16.msra.mxu0 %v637_v9 }
  0x26   : > { %408 = vmatpush.bf16.msra.mxu1 %v645_v10 }
  0x29   : > { %396 = vmatpush.bf16.msra.mxu0 %v636_v11 }
  0x2a   : > { %409 = vmatpush.bf16.msra.mxu1 %v644_v12 }
  0x2d   : > { %397 = vmatpush.bf16.msra.mxu0 %v635_v13 }
  0x2e   : > { %410 = vmatpush.bf16.msra.mxu1 %v643_v14 }
  0x31   : > { %398 = vmatpush.bf16.msra.mxu0 %v634_v15 }
  0x32   : > { %411 = vmatpush.bf16.msra.mxu1 %v642_v16 }
  0x34   : > { %399 = vmatmul.bf16.vlgmr.msra.gmra.mxu0 %v260_v19 }
  0x35   : > { %412 = vmatmul.bf16.vlgmr.msra.gmra.mxu1 %v261_v20 }
  0xb1   : > { %v400_v22 = vpop.f32.mrf.mxu0 }
  0xb2   : > { %v413_v24 = vpop.f32.mrf.mxu1 }
  0xb3   : > { %v414_v25 = vadd.f32 %v413_v24, %v400_v22 }
  0xb5   : > { %v417_v26 = vadd.f32 %v414_v25, %v262_v23 }
  0xb7   : > { %419 = vst.msk [vmem:[#allocation2] sm:$0xf] %vm251_vm0, %v417_v26 }
  0xb9   : > { %v402_v27 = vpop.f32.mrf.mxu0 }
  0xba   : > { %v415_v28 = vpop.f32.mrf.mxu1 }
  0xbe   : > { %v424_v29 = vld [vmem:[#allocation2] sm:$0xf] }
  0xbf   : > { %v425_v30 = vpack.c.bf16 %v424_v29, %v424_v29 }
  0xc1   : > { %v433_v31 = vsel %vm431_vm1, %v425_v30, 0 }
  0xc2   : > { %442 = vmatpush.bf16.msra.mxu2 %v433_v31 }
  0xc5   : > { %628 = vmatmul.msk.bf16.vlgmr.msra.gmra.mxu2 %vm427_vm2, %v423_v32 }
 0x148   : > { %v444_v34 = vpop.f32.mrf.mxu2 }
 0x149   : > { %v445_v35 = vadd.f32 %v444_v34, %v426_v33 }
 0x14b   : > { %v448_v36 = vmax.f32 %v445_v35, 0.0 }
 0x14d   : > { %v449_v37 = vpack.c.bf16 %v448_v36, %v448_v36 }
 0x14f   : > { %450 = vst.msk [vmem:[%s229_s26] sm:$0xf] %vm251_vm0, %v449_v37 }
 0x150   : > { %v446_v38 = vpop.f32.mrf.mxu2 }
 0x151   : > { %733 = shalt.err (!%p730_p5)
}
 0x152   : > { %650 = dma.vmem_to_hbm [thread:$0]  (%p852_p4), %s465_s29, 64, %s467_s30, %s452_s18  }
 0x153 PF: > { %p656_p6 = scmp.ge.s32.totalorder %s784_s20, 2  ;;  %s478_s10 = sand.u32 1, %s764_s15  }
 0x154   : > { %s479_s13 = scalar_lea.sflag [#allocation4], %s478_s10 }
 0x155   : > { %p653_p7 = pnand %p656_p6, %p859_p8 }
 0x157   : > { %p654_p9 = pneg %p653_p7 }
 0x159   : > { %759 = dma.done.wait (%p654_p9), %s479_s13, 64  }
 0x15a   : > { %761 = vsyncadd (%p654_p9), %s479_s13, 4294967232  ;;  %s17_s20 = sadd.s32 1, %s784_s20   ;;  %s973_s15 = smov %s768_s16 }
 0x15b   : > { %p14_p10 = scmp.ge.s32.totalorder %s17_s20, 4   ;;  %s974_s16 = smov %s772_s17 }
 0x15c   : > { %s975_s17 = smov %s865_s28  ;;  %s976_s18 = smov %s780_s19 }
 0x15d   : > { %s977_s19 = smov %s979_s23  ;;  %16 = sbr.rel (!%p14_p10) target bundleno = 4 (0x4), region = 82 }
 0x162   :  { %485 = vsyncpa [#allocation4], 1 }
 0x163   :  { %487 = vsyncpa [#allocation4 + $0x1], 1 }

</bundles_post_ra>
